<compile_context>
chip_gen: v6e
topology: v6e:2x2x1
jax: 0.10.0
libtpu: 0.0.40
codegen_flags: <defaults>
</compile_context>

<pallas_src>
import functools

import jax
import jax.numpy as jnp
from jax import lax
from jax.experimental import pallas as pl
from jax.experimental.pallas import tpu as pltpu

INPUT_DIM = 48
EMBEDDING_DIM = 32
NUM_HEADS = 4
OUTPUT_DIM = 24
MODULE_RANGES = [(0, 2), (2, 4)]
VAR_WEIGHT = 1.0          # prior_var_weight * 1.0 (training mode)
KL_WEIGHT_MULT = 1.0
KL_WARMUP_STEPS = 0


# --------------------------------------------------------------------------- #
# Fused kernel: input proj + block-diag mu/logvar + reparam + KL + output proj
# --------------------------------------------------------------------------- #
def _fused_bottleneck_kernel(
        x_ref,         # (M, Din)
        w_in_ref,      # (Din, E)      = W_in.T
        w_mu_ref,      # (E, E)        block-diagonal mu weights (transposed)
        w_var_ref,     # (E, E)        block-diagonal logvar weights (transposed)
        w_out_ref,     # (E, Dout)     = W_out.T
        eps_ref,       # (M, E)
        seg_mean_ref,  # (B, M)        1/L in each batch's token columns
        out_ref,       # (2M, Dout)    rows [0:M) = post proj, rows [M:2M) = pooled proj
        kl_ref,        # (B, 1)
        *, var_weight):
    x = x_ref[...]

    # input_projection (full width, one matmul).
    h = jnp.dot(x, w_in_ref[...], preferred_element_type=jnp.float32)

    # mu / logvar projections; block-diagonal weights => per-module semantics.
    mu = jnp.dot(h, w_mu_ref[...], preferred_element_type=jnp.float32)
    lv = jnp.dot(h, w_var_ref[...], preferred_element_type=jnp.float32)

    # reparameterize_gaussian(mu, logvar, var_weight)
    std = jnp.exp(0.5 * lv)
    post = mu + eps_ref[...] * std * var_weight

    # output_projection for both post and pooled with ONE matmul:
    #   [post ; h] @ W_out.T  -> (2M, Dout), single lane-dense store.
    stacked = jnp.concatenate([post, h], axis=0)
    out_ref[...] = jnp.dot(
        stacked, w_out_ref[...], preferred_element_type=jnp.float32
    ).astype(out_ref.dtype)

    # gaussian_kl summed over both modules (full-width sum == sum of the two
    # per-module sums; the "+1" contributes 16+16 either way).  exp(logvar)
    # is reused as std*std.
    kl_tok = -0.5 * jnp.sum(1.0 + lv - mu * mu - std * std,
                            axis=-1, keepdims=True)            # (M, 1)
    # per-batch mean over the sequence axis as one tiny matmul (replaces the
    # python loop of masked single-row stores; works for any seq_len).
    kl_ref[...] = jnp.dot(seg_mean_ref[...], kl_tok,
                          preferred_element_type=jnp.float32)


def fused_forward(kw, x2, eps, seg_mean, *, var_weight):
    m, din = x2.shape
    emb = kw["w_mu_bd"].shape[0]
    dout = kw["w_out_t"].shape[1]
    b = seg_mean.shape[0]

    def full(shp):
        return pl.BlockSpec(shp, lambda i, _s=shp: (0,) * len(_s))

    combined, kl = pl.pallas_call(
        functools.partial(_fused_bottleneck_kernel, var_weight=var_weight),
        out_shape=(
            jax.ShapeDtypeStruct((2 * m, dout), x2.dtype),
            jax.ShapeDtypeStruct((b, 1), jnp.float32),
        ),
        grid=(1,),
        in_specs=[
            full((m, din)),
            full((din, emb)),
            full((emb, emb)),
            full((emb, emb)),
            full((emb, dout)),
            full((m, emb)),
            full((b, m)),
        ],
        out_specs=(
            full((2 * m, dout)),
            full((b, 1)),
        ),
        compiler_params=pltpu.CompilerParams(
            dimension_semantics=("arbitrary",)),
    )(x2, kw["w_in_t"], kw["w_mu_bd"], kw["w_var_bd"], kw["w_out_t"],
      eps, seg_mean)

    post2 = combined[:m]
    pooled2 = combined[m:]
    return post2, pooled2, kl


# --------------------------------------------------------------------------- #
# Parameter init (PyTorch nn.Linear layout) + one-time kernel-layout prep
# --------------------------------------------------------------------------- #
def init_params(key):
    dph = EMBEDDING_DIM // NUM_HEADS
    keys = jax.random.split(key, 2 + 2 * len(MODULE_RANGES))
    params = {
        "w_in": jax.random.normal(keys[0], (EMBEDDING_DIM, INPUT_DIM), jnp.float32)
                / jnp.sqrt(float(INPUT_DIM)),
        "w_out": jax.random.normal(keys[1], (OUTPUT_DIM, EMBEDDING_DIM), jnp.float32)
                 / jnp.sqrt(float(EMBEDDING_DIM)),
        "modules": [],
    }
    # NOTE: the PyTorch __init__ also builds an (unused for pooling=False)
    # logvar_pooling submodule; it never touches this forward path.
    for mi, (r0, r1) in enumerate(MODULE_RANGES):
        dm = dph * (r1 - r0)
        params["modules"].append({
            "w_mu": jax.random.normal(keys[2 + 2 * mi], (dm, dm), jnp.float32)
                    / jnp.sqrt(float(dm)),
            "w_var": jax.random.normal(keys[3 + 2 * mi], (dm, dm), jnp.float32)
                     / jnp.sqrt(float(dm)),
        })
    return params


def prepare_kernel_weights(params):
    """One-time host-side packing: transpose + block-diagonal merge."""
    dph = EMBEDDING_DIM // NUM_HEADS
    w_mu_bd = jnp.zeros((EMBEDDING_DIM, EMBEDDING_DIM), jnp.float32)
    w_var_bd = jnp.zeros((EMBEDDING_DIM, EMBEDDING_DIM), jnp.float32)
    for mi, (r0, r1) in enumerate(MODULE_RANGES):
        s, e = dph * r0, dph * r1
        w_mu_bd = w_mu_bd.at[s:e, s:e].set(params["modules"][mi]["w_mu"].T)
        w_var_bd = w_var_bd.at[s:e, s:e].set(params["modules"][mi]["w_var"].T)
    return {
        "w_in_t": jnp.asarray(params["w_in"].T),     # (Din, E)
        "w_out_t": jnp.asarray(params["w_out"].T),   # (E, Dout)
        "w_mu_bd": w_mu_bd,                          # (E, E) block diagonal
        "w_var_bd": w_var_bd,                        # (E, E) block diagonal
    }


# --------------------------------------------------------------------------- #
# Full module forward
# --------------------------------------------------------------------------- #
def modular_bottleneck_forward(kernel_weights, encoding, memory, global_step,
                               noise_key):
    B, L, din = encoding.shape

    if KL_WARMUP_STEPS == 0:
        kl_weight = 1.0 * KL_WEIGHT_MULT
    else:
        kl_weight = (1.0 if global_step >= 2 * KL_WARMUP_STEPS
                     else 0.0 if global_step < KL_WARMUP_STEPS
                     else float(global_step - KL_WARMUP_STEPS) / KL_WARMUP_STEPS
                     ) * KL_WEIGHT_MULT

    # torch.randn_like(std) equivalent: one full-width draw (sampled outside
    # the kernel to keep an explicit, reproducible random stream).
    eps = jax.random.normal(noise_key, (B * L, EMBEDDING_DIM), encoding.dtype)

    # (B, B*L) segment-mean matrix: 1/L in each batch's token columns.
    seg_ids = jnp.repeat(jnp.arange(B), L)
    seg_mean = (jnp.arange(B)[:, None] == seg_ids[None, :]).astype(
        jnp.float32) / float(L)

    x2 = encoding.reshape(B * L, din)
    post2, pooled2, kl = fused_forward(
        kernel_weights, x2, eps, seg_mean, var_weight=VAR_WEIGHT)

    memory["loss"] = memory.get("loss", 0.0) + kl.reshape(B) * kl_weight
    # PyTorch detaches the pooled concat BEFORE the output projection; for the
    # forward pass stop_gradient on the projected result is value-identical.
    # TODO(synk): if this path is ever differentiated, move the detach before
    # the projection to match PyTorch gradient semantics for W_out.
    memory["encoding_pooled"] = lax.stop_gradient(
        pooled2.reshape(B, L, OUTPUT_DIM))
    full_encoding_post = post2.reshape(B, L, OUTPUT_DIM)
    return full_encoding_post, memory


# TODO(synk): the MultiHeadedPooling / VQ-VAE / HRQ-VAE / pythae-quantizer /
# vMF / hyperbolic branches of BottleneckPart are config-gated and not
# exercised by this config (pooling=False, variational VAE); not implemented.

if __name__ == "__main__":
    key = jax.random.PRNGKey(0)
    pkey, xkey, nkey = jax.random.split(key, 3)
    params = init_params(pkey)
    kernel_weights = prepare_kernel_weights(params)

    B, L = 2, 8
    encoding = jax.random.normal(xkey, (B, L, INPUT_DIM), jnp.float32)
    memory = {}

    full_post, memory = modular_bottleneck_forward(
        kernel_weights, encoding, memory, global_step=100, noise_key=nkey)

    jax.block_until_ready(full_post)
    jax.block_until_ready(memory["loss"])
    jax.block_until_ready(memory["encoding_pooled"])

    assert full_post.shape == (B, L, OUTPUT_DIM)
    assert memory["encoding_pooled"].shape == (B, L, OUTPUT_DIM)
    assert memory["loss"].shape == (B,)

    # -------- pure-JAX reference (same eps stream) for numerical check ------ #
    dph = EMBEDDING_DIM // NUM_HEADS
    h_ref = jnp.matmul(encoding, params["w_in"].T, precision="highest")
    eps_ref = jax.random.normal(nkey, (B * L, EMBEDDING_DIM),
                                encoding.dtype).reshape(B, L, EMBEDDING_DIM)
    posts, kls = [], []
    for mi, (r0, r1) in enumerate(MODULE_RANGES):
        s, e = dph * r0, dph * r1
        hm = h_ref[:, :, s:e]
        mu = jnp.matmul(hm, params["modules"][mi]["w_mu"].T, precision="highest")
        lv = jnp.matmul(hm, params["modules"][mi]["w_var"].T, precision="highest")
        posts.append(mu + eps_ref[:, :, s:e] * jnp.exp(0.5 * lv) * VAR_WEIGHT)
        kls.append(jnp.mean(
            -0.5 * jnp.sum(1.0 + lv - mu * mu - jnp.exp(lv), axis=-1), axis=1))
    ref_post = jnp.matmul(jnp.concatenate(posts, axis=-1), params["w_out"].T,
                          precision="highest")
    ref_pooled = jnp.matmul(h_ref, params["w_out"].T, precision="highest")
    ref_loss = (kls[0] + kls[1]) * 1.0

    assert bool(jnp.all(jnp.isfinite(full_post)))
    assert bool(jnp.all(jnp.isfinite(memory["loss"])))
    assert bool(jnp.allclose(full_post, ref_post, rtol=1e-3, atol=1e-3))
    assert bool(jnp.allclose(memory["encoding_pooled"], ref_pooled,
                             rtol=1e-3, atol=1e-3))
    assert bool(jnp.allclose(memory["loss"], ref_loss, rtol=1e-3, atol=1e-3))
    print("KERNEL_OK")
</pallas_src>

<mosaic_0001>
module attributes {stable_mosaic.version = 11 : i64} {
  func.func @_fused_bottleneck_kernel(%arg0: i32, %arg1: memref<16x48xf32, #tpu.memory_space<vmem>>, %arg2: memref<48x32xf32, #tpu.memory_space<vmem>>, %arg3: memref<32x32xf32, #tpu.memory_space<vmem>>, %arg4: memref<32x32xf32, #tpu.memory_space<vmem>>, %arg5: memref<32x24xf32, #tpu.memory_space<vmem>>, %arg6: memref<16x32xf32, #tpu.memory_space<vmem>>, %arg7: memref<2x16xf32, #tpu.memory_space<vmem>>, %arg8: memref<32x24xf32, #tpu.memory_space<vmem>>, %arg9: memref<2x1xf32, #tpu.memory_space<vmem>>) attributes {dimension_semantics = [#tpu.dimension_semantics<arbitrary>], iteration_bounds = array<i64: 1>, scalar_prefetch = 0 : i64, scratch_operands = 0 : i64, tpu.core_type = #tpu.core_type<tc>, window_params = [{pipeline_mode = #tpu.pipeline_mode<synchronous>, transform_indices = @transform_0, window_bounds = array<i64: 16, 48>}, {pipeline_mode = #tpu.pipeline_mode<synchronous>, transform_indices = @transform_1, window_bounds = array<i64: 48, 32>}, {pipeline_mode = #tpu.pipeline_mode<synchronous>, transform_indices = @transform_2, window_bounds = array<i64: 32, 32>}, {pipeline_mode = #tpu.pipeline_mode<synchronous>, transform_indices = @transform_3, window_bounds = array<i64: 32, 32>}, {pipeline_mode = #tpu.pipeline_mode<synchronous>, transform_indices = @transform_4, window_bounds = array<i64: 32, 24>}, {pipeline_mode = #tpu.pipeline_mode<synchronous>, transform_indices = @transform_5, window_bounds = array<i64: 16, 32>}, {pipeline_mode = #tpu.pipeline_mode<synchronous>, transform_indices = @transform_6, window_bounds = array<i64: 2, 16>}, {pipeline_mode = #tpu.pipeline_mode<synchronous>, transform_indices = @transform_7, window_bounds = array<i64: 32, 24>}, {pipeline_mode = #tpu.pipeline_mode<synchronous>, transform_indices = @transform_8, window_bounds = array<i64: 2, 1>}]} {
    %c0 = arith.constant 0 : index
    %c0_0 = arith.constant 0 : index
    %0 = vector.load %arg1[%c0, %c0_0] : memref<16x48xf32, #tpu.memory_space<vmem>>, vector<16x48xf32>
    %c0_1 = arith.constant 0 : index
    %c0_2 = arith.constant 0 : index
    %1 = vector.load %arg2[%c0_1, %c0_2] : memref<48x32xf32, #tpu.memory_space<vmem>>, vector<48x32xf32>
    %cst = arith.constant dense<0.000000e+00> : vector<16x32xf32>
    %2 = tpu.matmul %0, %1, %cst {dimension_numbers = #tpu.dot_dimension_numbers<[1], [0], [0], [1], [0, 0, 1, 1], [], []>} : vector<16x48xf32>, vector<48x32xf32>, vector<16x32xf32> -> vector<16x32xf32>
    %c0_3 = arith.constant 0 : index
    %c0_4 = arith.constant 0 : index
    %3 = vector.load %arg3[%c0_3, %c0_4] : memref<32x32xf32, #tpu.memory_space<vmem>>, vector<32x32xf32>
    %cst_5 = arith.constant dense<0.000000e+00> : vector<16x32xf32>
    %4 = tpu.matmul %2, %3, %cst_5 {dimension_numbers = #tpu.dot_dimension_numbers<[1], [0], [0], [1], [0, 0, 1, 1], [], []>} : vector<16x32xf32>, vector<32x32xf32>, vector<16x32xf32> -> vector<16x32xf32>
    %c0_6 = arith.constant 0 : index
    %c0_7 = arith.constant 0 : index
    %5 = vector.load %arg4[%c0_6, %c0_7] : memref<32x32xf32, #tpu.memory_space<vmem>>, vector<32x32xf32>
    %cst_8 = arith.constant dense<0.000000e+00> : vector<16x32xf32>
    %6 = tpu.matmul %2, %5, %cst_8 {dimension_numbers = #tpu.dot_dimension_numbers<[1], [0], [0], [1], [0, 0, 1, 1], [], []>} : vector<16x32xf32>, vector<32x32xf32>, vector<16x32xf32> -> vector<16x32xf32>
    %cst_9 = arith.constant 5.000000e-01 : f32
    %7 = vector.broadcast %cst_9 : f32 to vector<16x32xf32>
    %8 = arith.mulf %7, %6 : vector<16x32xf32>
    %9 = math.exp %8 : vector<16x32xf32>
    %c0_10 = arith.constant 0 : index
    %c0_11 = arith.constant 0 : index
    %10 = vector.load %arg6[%c0_10, %c0_11] : memref<16x32xf32, #tpu.memory_space<vmem>>, vector<16x32xf32>
    %11 = arith.mulf %10, %9 : vector<16x32xf32>
    %cst_12 = arith.constant 1.000000e+00 : f32
    %12 = vector.broadcast %cst_12 : f32 to vector<16x32xf32>
    %13 = arith.mulf %11, %12 : vector<16x32xf32>
    %14 = arith.addf %4, %13 : vector<16x32xf32>
    %15 = tpu.concatenate %14, %2 in 0 : vector<16x32xf32>, vector<16x32xf32> -> vector<32x32xf32>
    %c0_13 = arith.constant 0 : index
    %c0_14 = arith.constant 0 : index
    %16 = vector.load %arg5[%c0_13, %c0_14] : memref<32x24xf32, #tpu.memory_space<vmem>>, vector<32x24xf32>
    %cst_15 = arith.constant dense<0.000000e+00> : vector<32x24xf32>
    %17 = tpu.matmul %15, %16, %cst_15 {dimension_numbers = #tpu.dot_dimension_numbers<[1], [0], [0], [1], [0, 0, 1, 1], [], []>} : vector<32x32xf32>, vector<32x24xf32>, vector<32x24xf32> -> vector<32x24xf32>
    %c0_16 = arith.constant 0 : index
    %c0_17 = arith.constant 0 : index
    %18 = vector.load %arg8[%c0_16, %c0_17] : memref<32x24xf32, #tpu.memory_space<vmem>>, vector<32x24xf32>
    tpu.vector_store %arg8[%c0_16, %c0_17], %17 {strides = array<i32>} : memref<32x24xf32, #tpu.memory_space<vmem>>, vector<32x24xf32>,
    %cst_18 = arith.constant 1.000000e+00 : f32
    %19 = vector.broadcast %cst_18 : f32 to vector<16x32xf32>
    %20 = arith.addf %19, %6 : vector<16x32xf32>
    %21 = arith.mulf %4, %4 : vector<16x32xf32>
    %22 = arith.subf %20, %21 : vector<16x32xf32>
    %23 = arith.mulf %9, %9 : vector<16x32xf32>
    %24 = arith.subf %22, %23 : vector<16x32xf32>
    %cst_19 = arith.constant dense<0.000000e+00> : vector<16xf32>
    %25 = vector.multi_reduction <add>, %24, %cst_19 [1] : vector<16x32xf32> to vector<16xf32>
    %26 = vector.shape_cast %25 : vector<16xf32> to vector<16x1xf32>
    %cst_20 = arith.constant -5.000000e-01 : f32
    %27 = vector.broadcast %cst_20 : f32 to vector<16x1xf32>
    %28 = arith.mulf %27, %26 : vector<16x1xf32>
    %c0_21 = arith.constant 0 : index
    %c0_22 = arith.constant 0 : index
    %29 = vector.load %arg7[%c0_21, %c0_22] : memref<2x16xf32, #tpu.memory_space<vmem>>, vector<2x16xf32>
    %cst_23 = arith.constant dense<0.000000e+00> : vector<2x1xf32>
    %30 = tpu.matmul %29, %28, %cst_23 {dimension_numbers = #tpu.dot_dimension_numbers<[1], [0], [0], [1], [0, 0, 1, 1], [], []>} : vector<2x16xf32>, vector<16x1xf32>, vector<2x1xf32> -> vector<2x1xf32>
    %c0_24 = arith.constant 0 : index
    %c0_25 = arith.constant 0 : index
    %31 = vector.load %arg9[%c0_24, %c0_25] : memref<2x1xf32, #tpu.memory_space<vmem>>, vector<2x1xf32>
    tpu.vector_store %arg9[%c0_24, %c0_25], %30 {strides = array<i32>} : memref<2x1xf32, #tpu.memory_space<vmem>>, vector<2x1xf32>,
    return
  }
  func.func @transform_0(%arg0: i32) -> (i32, i32) {
    %c0_i32 = arith.constant 0 : i32
    %c0_i32_0 = arith.constant 0 : i32
    %c0_i32_1 = arith.constant 0 : i32
    return %c0_i32, %c0_i32_0 : i32, i32
  }
  func.func @transform_1(%arg0: i32) -> (i32, i32) {
    %c0_i32 = arith.constant 0 : i32
    %c0_i32_0 = arith.constant 0 : i32
    %c0_i32_1 = arith.constant 0 : i32
    return %c0_i32, %c0_i32_0 : i32, i32
  }
  func.func @transform_2(%arg0: i32) -> (i32, i32) {
    %c0_i32 = arith.constant 0 : i32
    %c0_i32_0 = arith.constant 0 : i32
    %c0_i32_1 = arith.constant 0 : i32
    return %c0_i32, %c0_i32_0 : i32, i32
  }
  func.func @transform_3(%arg0: i32) -> (i32, i32) {
    %c0_i32 = arith.constant 0 : i32
    %c0_i32_0 = arith.constant 0 : i32
    %c0_i32_1 = arith.constant 0 : i32
    return %c0_i32, %c0_i32_0 : i32, i32
  }
  func.func @transform_4(%arg0: i32) -> (i32, i32) {
    %c0_i32 = arith.constant 0 : i32
    %c0_i32_0 = arith.constant 0 : i32
    %c0_i32_1 = arith.constant 0 : i32
    return %c0_i32, %c0_i32_0 : i32, i32
  }
  func.func @transform_5(%arg0: i32) -> (i32, i32) {
    %c0_i32 = arith.constant 0 : i32
    %c0_i32_0 = arith.constant 0 : i32
    %c0_i32_1 = arith.constant 0 : i32
    return %c0_i32, %c0_i32_0 : i32, i32
  }
  func.func @transform_6(%arg0: i32) -> (i32, i32) {
    %c0_i32 = arith.constant 0 : i32
    %c0_i32_0 = arith.constant 0 : i32
    %c0_i32_1 = arith.constant 0 : i32
    return %c0_i32, %c0_i32_0 : i32, i32
  }
  func.func @transform_7(%arg0: i32) -> (i32, i32) {
    %c0_i32 = arith.constant 0 : i32
    %c0_i32_0 = arith.constant 0 : i32
    %c0_i32_1 = arith.constant 0 : i32
    return %c0_i32, %c0_i32_0 : i32, i32
  }
  func.func @transform_8(%arg0: i32) -> (i32, i32) {
    %c0_i32 = arith.constant 0 : i32
    %c0_i32_0 = arith.constant 0 : i32
    %c0_i32_1 = arith.constant 0 : i32
    return %c0_i32, %c0_i32_0 : i32, i32
  }
}

</mosaic_0001>

<bundles_post_ra>
// kernel: tpu_custom_call.1
= control target key start
LH: loop header
LB: loop body
LE: loop exit
PB: predicated region body
PF: predicated region fallthrough
CT: control target
= control target key end

     0   :  { %vm36_vm0 = vcmask 392192   ;;  %vm122_vm1 = vcmask 261120   ;;  %v604_v50 = vmov 0.0   ;;  %vm605_vm2 = vmmov 0   ;;  %s752_s1 = inlined_call_operand.vmem [shape: f32[48,32], index: 1, kind: input, shape index: {}]   ;;  %s753_s0 = inlined_call_operand.vmem [shape: f32[16,48], index: 0, kind: input, shape index: {}]   ;;  %s754_s2 = inlined_call_operand.vmem [shape: f32[32,32], index: 2, kind: input, shape index: {}]   ;;  %s755_s3 = inlined_call_operand.vmem [shape: f32[32,32], index: 3, kind: input, shape index: {}]   ;;  %s756_s4 = inlined_call_operand.vmem [shape: f32[32,24], index: 4, kind: input, shape index: {}]   ;;  %s757_s5 = inlined_call_operand.vmem [shape: f32[16,32], index: 5, kind: input, shape index: {}]   ;;  %s758_s6 = inlined_call_operand.vmem [shape: f32[2,16], index: 6, kind: input, shape index: {}]   ;;  %s759_s7 = inlined_call_operand.vmem [shape: f32[32,24], index: 7, kind: output, shape index: {0}]   ;;  %s760_s8 = inlined_call_operand.vmem [shape: f32[2,1], index: 8, kind: output, shape index: {1}]  }
   0x1   :  { %v35_v0 = vld [vmem:[%s752_s1 + $0x28] sm:$0xff]  ;;  %v34_v1 = vld [vmem:[%s752_s1 + $0x20] sm:$0xff]  ;;  %v33_v2 = vld [vmem:[%s752_s1 + $0x18] sm:$0xff]  ;;  %vm414_vm3 = vcmask 130048   ;;  %vm390_vm4 = vcmask 195584   ;;  %vm488_vm5 = vcmask 1024  }
   0x2   :  { %540 = vmatprep.subr.mxu0 %v35_v0  ;;  %v28_v3 = vld [vmem:[%s753_s0] sm:$0xff]  ;;  %v121_v4 = vld [vmem:[%s754_s2 + $0x18] sm:$0xff]  ;;  %v120_v5 = vld [vmem:[%s754_s2 + $0x10] sm:$0xff] }
   0x3   :  { %541 = vmatpush3.msra.mxu0 %v35_v0  ;;  %552 = vmatprep.mubr.msk.f32.mxu0 %vm36_vm0, %v28_v3  ;;  %v32_v6 = vld [vmem:[%s752_s1 + $0x10] sm:$0xff]  ;;  %v119_v7 = vld [vmem:[%s754_s2 + $0x8] sm:$0xff]  ;;  %v30_v9 = vld [vmem:[%s752_s1] sm:$0xff] }
   0x4   :  { %542 = vmatprep.subr.mxu0 %v34_v1  ;;  %555 = vmatprep.subr.mxu1 %v121_v4  ;;  %v31_v8 = vld [vmem:[%s752_s1 + $0x8] sm:$0xff]  ;;  %v118_v11 = vld [vmem:[%s754_s2] sm:$0xff]  ;;  %v207_v12 = vld [vmem:[%s755_s3 + $0x18] sm:$0xff] }
   0x5   :  { %543 = vmatpush3.msra.mxu0 %v34_v1  ;;  %556 = vmatpush3.msra.mxu1 %v121_v4  ;;  %v29_v10 = vld [vmem:[%s753_s0 + $0x8] sm:$0xff]  ;;  %v206_v15 = vld [vmem:[%s755_s3 + $0x10] sm:$0xff]  ;;  %v204_v17 = vld [vmem:[%s755_s3] sm:$0xff] }
   0x6   :  { %544 = vmatprep.subr.mxu0 %v33_v2  ;;  %557 = vmatprep.subr.mxu1 %v120_v5  ;;  %v205_v16 = vld [vmem:[%s755_s3 + $0x8] sm:$0xff]  ;;  %v298_v18 = vld [vmem:[%s756_s4 + $0x18] sm:$0xff]  ;;  %v297_v19 = vld [vmem:[%s756_s4 + $0x10] sm:$0xff] }
   0x7   :  { %545 = vmatpush3.msra.mxu0 %v33_v2  ;;  %558 = vmatpush3.msra.mxu1 %v120_v5  ;;  %v296_v20 = vld [vmem:[%s756_s4 + $0x8] sm:$0xff]  ;;  %v295_v21 = vld [vmem:[%s756_s4] sm:$0xff] }
   0x8   :  { %546 = vmatprep.subr.mxu0 %v32_v6  ;;  %559 = vmatprep.subr.mxu1 %v119_v7  ;;  %v290_v33 = vld [vmem:[%s757_s5 + $0x8] sm:$0xff]  ;;  %v289_v35 = vld [vmem:[%s757_s5] sm:$0xff] }
   0x9   :  { %547 = vmatpush3.msra.mxu0 %v32_v6  ;;  %560 = vmatpush3.msra.mxu1 %v119_v7  ;;  %v413_v55 = vld [vmem:[%s758_s6] sm:$0x3] }
   0xa   :  { %548 = vmatprep.subr.mxu0 %v31_v8  ;;  %561 = vmatprep.subr.mxu1 %v118_v11 }
   0xb   :  { %549 = vmatpush3.msra.mxu0 %v31_v8  ;;  %562 = vmatpush3.msra.mxu1 %v118_v11 }
   0xc   :  { %550 = vmatprep.subr.mxu0 %v30_v9  ;;  %566 = vmatprep.subr.mxu1 %v207_v12 }
   0xd   :  { %551 = vmatpush3.msra.mxu0 %v30_v9 }
   0xe   :  { %553 = vmatmul.mubr.msk.f32.vlgmr.msra.gmra.mxu0 %vm36_vm0, %v29_v10  ;;  %577 = vmatprep.subr.mxu0 %v298_v18 }
   0xf   :  { %578 = vmatpush3.msra.mxu0 %v298_v18 }
  0x10   :  { %579 = vmatprep.subr.mxu0 %v297_v19 }
  0x11   :  { %580 = vmatpush3.msra.mxu0 %v297_v19 }
  0x12   :  { %581 = vmatprep.subr.mxu0 %v296_v20 }
  0x13   :  { %582 = vmatpush3.msra.mxu0 %v296_v20 }
  0x14   :  { %583 = vmatprep.subr.mxu0 %v295_v21 }
  0x15   :  { %584 = vmatpush3.msra.mxu0 %v295_v21 }
  0xce   :  { %v692_v13 = vpop.f32.mrf.mxu0 }
  0xd0   :  { %v109_v14 = vpop.f32.mrf.mxu0 }
  0xd1   :  { %563 = vmatprep.mubr.msk.f32.mxu1 %vm122_vm1, %v109_v14 }
  0xd2   :  { %564 = vmatmul.mubr.msk.f32.vlgmr.msra.gmra.mxu1 %vm122_vm1, %v692_v13 }
  0xd3   :  { %567 = vmatpush3.msra.mxu1 %v207_v12  ;;  %574 = vmatprep.mubr.msk.f32.mxu1 %vm122_vm1, %v109_v14 }
  0xd4   :  { %568 = vmatprep.subr.mxu1 %v206_v15 }
  0xd5   :  { %569 = vmatpush3.msra.mxu1 %v206_v15 }
  0xd6   :  { %570 = vmatprep.subr.mxu1 %v205_v16 }
  0xd7   :  { %571 = vmatpush3.msra.mxu1 %v205_v16 }
  0xd8   :  { %572 = vmatprep.subr.mxu1 %v204_v17 }
  0xd9   :  { %573 = vmatpush3.msra.mxu1 %v204_v17 }
  0xda   :  { %575 = vmatmul.mubr.msk.f32.vlgmr.msra.gmra.mxu1 %vm122_vm1, %v692_v13  ;;  %591 = vmatprep.subr.mxu1 %v604_v50 }
  0xdb   :  { %595 = vmatprep.mubr.msk.f32.mxu1 %vm605_vm2, %v604_v50 }
 0x192   :  { %v565_v22 = vpop.f32.mrf.mxu1 }
 0x193   :  { %v398_v31 = vmul.f32 %v565_v22, %v565_v22 }
 0x194   :  { %v195_v23 = vpop.f32.mrf.mxu1 }
 0x195   :  { %v397_v36 = vmul.f32 %v195_v23, %v195_v23 }
 0x19a   :  { %v576_v24 = vpop.f32.mrf.mxu1 }
 0x19b   :  { %v284_v25 = vmul.f32 0.5, %v576_v24  ;;  %v396_v30 = vadd.f32 1.0, %v576_v24 }
 0x19c   :  { %v274_v26 = vpop.f32.mrf.mxu1 }
 0x19d   :  { %v287_v27 = vmul.f32 1.442695, %v284_v25  ;;  %v283_v28 = vmul.f32 0.5, %v274_v26  ;;  %v395_v32 = vadd.f32 1.0, %v274_v26  ;;  %v400_v37 = vsub.f32 %v396_v30, %v398_v31 }
 0x19f   :  { %600 = vpow2.f32 %v287_v27  ;;  %v285_v29 = vmul.f32 1.442695, %v283_v28  ;;  %v399_v41 = vsub.f32 %v395_v32, %v397_v36 }
 0x1a1   :  { %602 = vpow2.f32 %v285_v29 }
 0x1ac   :  { %v601_v34 = vpop.eup %600 }
 0x1ad   :  { %v402_v38 = vmul.f32 %v601_v34, %v601_v34  ;;  %v292_v40 = vmul.f32 %v601_v34, %v290_v33 }
 0x1ae   :  { %v603_v39 = vpop.eup %602 }
 0x1af   :  { %v404_v42 = vsub.f32 %v400_v37, %v402_v38  ;;  %v291_v43 = vmul.f32 %v603_v39, %v289_v35  ;;  %v401_v44 = vmul.f32 %v603_v39, %v603_v39  ;;  %v294_v48 = vadd.f32 %v565_v22, %v292_v40 }
 0x1b1   :  { %v408_v45 = vsel %vm122_vm1, %v404_v42, 0.0  ;;  %v293_v46 = vadd.f32 %v291_v43, %v195_v23  ;;  %v403_v47 = vsub.f32 %v399_v41, %v401_v44 }
 0x1b2   :  { %409 = vadd.xlane.f32.xlu0 %v408_v45 }
 0x1b3   :  { %585 = vmatprep.mubr.msk.f32.mxu0 %vm122_vm1, %v293_v46  ;;  %v405_v49 = vsel %vm122_vm1, %v403_v47, 0.0 }
 0x1b4   :  { %586 = vmatmul.mubr.msk.f32.vlgmr.msra.gmra.mxu0 %vm122_vm1, %v294_v48 }
 0x1b5   :  { %588 = vmatprep.mubr.msk.f32.mxu0 %vm122_vm1, %v109_v14 }
 0x1b6   :  { %406 = vadd.xlane.f32.xlu0 %v405_v49 }
 0x1b8   :  { %589 = vmatmul.mubr.msk.f32.gmra.mxu0 %vm122_vm1, %v692_v13 }
 0x23b   :  { %v410_v51 = vpop.xlane.xlu0 %409 }
 0x23c   :  { %v412_v52 = vmul.f32 -0.5, %v410_v51 }
 0x23e   :  { %592 = vmatpush3.msra.mxu1 %v412_v52 }
 0x23f   :  { %v407_v53 = vpop.xlane.xlu0 %406  ;;  %593 = vmatprep.subr.mxu1 %v604_v50 }
 0x240   :  { %v411_v54 = vmul.f32 -0.5, %v407_v53 }
 0x242   :  { %594 = vmatpush3.msra.mxu1 %v411_v54 }
 0x243   :  { %596 = vmatmul.mubr.msk.f32.vlgmr.msra.gmra.mxu1 %vm414_vm3, %v413_v55 }
 0x274   :  { %v587_v56 = vpop.f32.mrf.mxu0 }
 0x275   :  { %392 = vst.msk [vmem:[%s759_s7 + $0x8] sm:$0xff] %vm390_vm4, %v587_v56 }
 0x276   :  { %v371_v57 = vpop.f32.mrf.mxu0 }
 0x277   :  { %391 = vst.msk [vmem:[%s759_s7] sm:$0xff] %vm390_vm4, %v371_v57 }
 0x278   :  { %v590_v58 = vpop.f32.mrf.mxu0 }
 0x279   :  { %394 = vst.msk [vmem:[%s759_s7 + $0x18] sm:$0xff] %vm390_vm4, %v590_v58 }
 0x27a   :  { %v381_v59 = vpop.f32.mrf.mxu0 }
 0x27b   :  { %393 = vst.msk [vmem:[%s759_s7 + $0x10] sm:$0xff] %vm390_vm4, %v381_v59 }
 0x303   :  { %v484_v60 = vpop.f32.mrf.mxu1 }
 0x304   :  { %489 = vst.msk [vmem:[%s760_s8] sm:$0x3] %vm488_vm5, %v484_v60 }
 0x305   :  { %v597_v61 = vpop.f32.mrf.mxu1 }

</bundles_post_ra>
